<compile_context>
chip_gen: v5e
topology: v5e:2x2
jax: 0.10.0
libtpu: 0.0.40
codegen_flags: <defaults>
</compile_context>

<pallas_src>
import functools

import jax
import jax.numpy as jnp
from jax.experimental import pallas as pl
from jax.experimental.pallas import tpu as pltpu

_LANE = 512                              # lane-dense last dim (multiple of 128)
_TARGET_BLOCK_BYTES = 2 * 1024 * 1024    # per input, per pipeline buffer
_VMEM_LIMIT_BYTES = 32 * 1024 * 1024     # safe on v5e / v6e / v7x


def _cdiv(a, b):
    return -(-a // b)


def _round_up(a, b):
    return _cdiv(a, b) * b


def _focal_loss_elems(x, t, alpha, gamma):
    """Per-element sigmoid focal loss in f32 (valid in-kernel and as reference)."""
    x = x.astype(jnp.float32)
    t = t.astype(jnp.float32)
    # One shared exp(-|x|) feeds both the stable BCE-with-logits and sigmoid.
    e = jnp.exp(-jnp.abs(x))
    ce = jnp.maximum(x, 0.0) - x * t + jnp.log1p(e)
    p = jnp.where(x >= 0.0, 1.0, e) / (1.0 + e)          # == sigmoid(x)
    p_t = p * t + (1.0 - p) * (1.0 - t)
    m = 1.0 - p_t
    g = float(gamma)
    if g == 0.0:
        mod = jnp.ones_like(m)
    elif g.is_integer() and 0.0 < g <= 8.0:
        # Integer gamma (common gamma=2 case): repeated multiply instead of
        # pow == exp(g*log(m)) -> removes 2 EUP transcendentals per element.
        mod = m
        for _ in range(int(g) - 1):
            mod = mod * m
    else:
        mod = m ** g
    loss = ce * mod
    if alpha >= 0:
        alpha_t = alpha * t + (1.0 - alpha) * (1.0 - t)
        loss = alpha_t * loss
    return loss


def _focal_partial_sum_kernel(x_ref, t_ref, out_ref, *, alpha, gamma):
    """Per-tile sublane-folded partial sums: (rows, lane) -> (8, lane)."""
    loss = _focal_loss_elems(x_ref[...], t_ref[...], alpha, gamma)
    rows, lane = loss.shape
    # Vreg-boundary-aligned reshape + VPU adds only; the expensive cross-lane
    # reduce happens exactly once, on a tiny array, in the JAX wrapper.
    out_ref[0] = jnp.sum(loss.reshape(rows // 8, 8, lane), axis=0)


def _focal_elementwise_kernel(x_ref, t_ref, out_ref, *, alpha, gamma):
    out_ref[...] = _focal_loss_elems(
        x_ref[...], t_ref[...], alpha, gamma).astype(out_ref.dtype)


def _tiling(n_elems):
    rows_needed = max(1, _cdiv(n_elems, _LANE))
    max_rows = max(8, (_TARGET_BLOCK_BYTES // (_LANE * 4)) // 8 * 8)  # 1024
    rows_per_tile = min(max_rows, _round_up(rows_needed, 8))
    grid = _cdiv(rows_needed, rows_per_tile)
    padded_rows = grid * rows_per_tile
    return rows_per_tile, grid, padded_rows


def _lane_dense(a, padded_rows, pad_value):
    flat = a.reshape(-1)
    pad = padded_rows * _LANE - flat.shape[0]
    if pad:
        flat = jnp.concatenate(
            [flat, jnp.full((pad,), pad_value, dtype=flat.dtype)])
    return flat.reshape(padded_rows, _LANE)


def focal_loss(inputs, targets, alpha=0.25, gamma=2.0, reduction="mean"):
    """JAX/Pallas equivalent of FocalLoss(alpha, gamma, reduction)(inputs, targets)."""
    assert inputs.shape == targets.shape
    n = int(inputs.size)
    rows_per_tile, grid, padded_rows = _tiling(n)
    n_padded = padded_rows * _LANE

    in_specs = [pl.BlockSpec((rows_per_tile, _LANE), lambda i: (i, 0)),
                pl.BlockSpec((rows_per_tile, _LANE), lambda i: (i, 0))]
    compiler_params = pltpu.CompilerParams(
        dimension_semantics=("parallel",),
        vmem_limit_bytes=_VMEM_LIMIT_BYTES)

    if reduction == "none":
        x2d = _lane_dense(inputs, padded_rows, 0.0)
        t2d = _lane_dense(targets, padded_rows, 0.0)
        out2d = pl.pallas_call(
            functools.partial(_focal_elementwise_kernel,
                              alpha=alpha, gamma=gamma),
            out_shape=jax.ShapeDtypeStruct((padded_rows, _LANE), inputs.dtype),
            grid_spec=pltpu.PrefetchScalarGridSpec(
                num_scalar_prefetch=0,
                grid=(grid,),
                in_specs=in_specs,
                out_specs=pl.BlockSpec((rows_per_tile, _LANE),
                                       lambda i: (i, 0)),
            ),
            compiler_params=compiler_params,
            cost_estimate=pl.CostEstimate(
                flops=15 * n_padded,
                transcendentals=3 * n_padded,
                bytes_accessed=(2 * 4 + inputs.dtype.itemsize) * n_padded),
        )(x2d, t2d)
        return out2d.reshape(-1)[:n].reshape(inputs.shape)

    if reduction not in ("mean", "sum"):
        raise ValueError(f"unsupported reduction: {reduction!r}")

    # Sentinel padding (x=60, t=1) yields exactly zero focal loss in f32, so
    # the ragged tail needs no in-kernel masking.
    x2d = _lane_dense(inputs, padded_rows, 60.0)
    t2d = _lane_dense(targets, padded_rows, 1.0)
    partials = pl.pallas_call(
        functools.partial(_focal_partial_sum_kernel, alpha=alpha, gamma=gamma),
        out_shape=jax.ShapeDtypeStruct((grid, 8, _LANE), jnp.float32),
        grid_spec=pltpu.PrefetchScalarGridSpec(
            num_scalar_prefetch=0,
            grid=(grid,),
            in_specs=in_specs,
            out_specs=pl.BlockSpec((1, 8, _LANE), lambda i: (i, 0, 0)),
        ),
        compiler_params=compiler_params,
        cost_estimate=pl.CostEstimate(
            flops=15 * n_padded,
            transcendentals=3 * n_padded,
            bytes_accessed=2 * 4 * n_padded + grid * 8 * _LANE * 4),
    )(x2d, t2d)

    total = jnp.sum(partials)   # tiny: grid * 8 * 512 floats
    if reduction == "mean":
        total = total / jnp.float32(n)
    return total.astype(inputs.dtype)


def _reference_focal_loss(inputs, targets, alpha=0.25, gamma=2.0,
                          reduction="mean"):
    loss = _focal_loss_elems(inputs, targets, alpha, gamma)
    if reduction == "mean":
        return jnp.mean(loss).astype(inputs.dtype)
    if reduction == "sum":
        return jnp.sum(loss).astype(inputs.dtype)
    return loss.astype(inputs.dtype)


if __name__ == "__main__":
    key = jax.random.PRNGKey(0)
    k1, k2 = jax.random.split(key)
    # Multi-label logits (e.g. birdclef species). C is deliberately not a
    # multiple of 128 to exercise the lane-dense flatten/pad path.
    B, C = 16, 182
    inputs = jax.random.normal(k1, (B, C), dtype=jnp.float32) * 2.0
    targets = (jax.random.uniform(k2, (B, C)) < 0.1).astype(jnp.float32)

    for reduction in ("mean", "sum", "none"):
        out = jax.block_until_ready(
            focal_loss(inputs, targets, 0.25, 2.0, reduction))
        ref = _reference_focal_loss(inputs, targets, 0.25, 2.0, reduction)
        assert jnp.allclose(out, ref, rtol=1e-5, atol=1e-6), (reduction, out, ref)

    print("KERNEL_OK")
</pallas_src>

<mosaic_0001>
module attributes {stable_mosaic.version = 11 : i64} {
  func.func @_focal_partial_sum_kernel(%arg0: i32, %arg1: memref<8x512xf32, #tpu.memory_space<vmem>>, %arg2: memref<8x512xf32, #tpu.memory_space<vmem>>, %arg3: memref<1x8x512xf32, #tpu.memory_space<vmem>>) attributes {dimension_semantics = [#tpu.dimension_semantics<parallel>], iteration_bounds = array<i64: 1>, scalar_prefetch = 0 : i64, scratch_operands = 0 : i64, tpu.core_type = #tpu.core_type<tc>, window_params = [{transform_indices = @transform_0, window_bounds = array<i64: 8, 512>}, {transform_indices = @transform_1, window_bounds = array<i64: 8, 512>}, {transform_indices = @transform_2, window_bounds = array<i64: 1, 8, 512>}]} {
    %c0 = arith.constant 0 : index
    %c0_0 = arith.constant 0 : index
    %0 = vector.load %arg1[%c0, %c0_0] : memref<8x512xf32, #tpu.memory_space<vmem>>, vector<8x512xf32>
    %c0_1 = arith.constant 0 : index
    %c0_2 = arith.constant 0 : index
    %1 = vector.load %arg2[%c0_1, %c0_2] : memref<8x512xf32, #tpu.memory_space<vmem>>, vector<8x512xf32>
    %2 = math.absf %0 : vector<8x512xf32>
    %cst = arith.constant 0.000000e+00 : f32
    %3 = vector.broadcast %cst : f32 to vector<8x512xf32>
    %4 = arith.subf %3, %2 : vector<8x512xf32>
    %5 = math.exp %4 : vector<8x512xf32>
    %cst_3 = arith.constant 0.000000e+00 : f32
    %6 = vector.broadcast %cst_3 : f32 to vector<8x512xf32>
    %7 = arith.maximumf %0, %6 : vector<8x512xf32>
    %8 = arith.mulf %0, %1 : vector<8x512xf32>
    %9 = arith.subf %7, %8 : vector<8x512xf32>
    %10 = math.log1p %5 : vector<8x512xf32>
    %11 = arith.addf %9, %10 : vector<8x512xf32>
    %cst_4 = arith.constant 0.000000e+00 : f32
    %12 = vector.broadcast %cst_4 : f32 to vector<8x512xf32>
    %13 = arith.cmpf oge, %0, %12 : vector<8x512xf32>
    %cst_5 = arith.constant 1.000000e+00 : f32
    %14 = vector.broadcast %cst_5 : f32 to vector<8x512xf32>
    %15 = arith.select %13, %14, %5 : vector<8x512xi1>, vector<8x512xf32>
    %cst_6 = arith.constant 1.000000e+00 : f32
    %16 = vector.broadcast %cst_6 : f32 to vector<8x512xf32>
    %17 = arith.addf %16, %5 : vector<8x512xf32>
    %18 = arith.divf %15, %17 : vector<8x512xf32>
    %19 = arith.mulf %18, %1 : vector<8x512xf32>
    %cst_7 = arith.constant 1.000000e+00 : f32
    %20 = vector.broadcast %cst_7 : f32 to vector<8x512xf32>
    %21 = arith.subf %20, %18 : vector<8x512xf32>
    %cst_8 = arith.constant 1.000000e+00 : f32
    %22 = vector.broadcast %cst_8 : f32 to vector<8x512xf32>
    %23 = arith.subf %22, %1 : vector<8x512xf32>
    %24 = arith.mulf %21, %23 : vector<8x512xf32>
    %25 = arith.addf %19, %24 : vector<8x512xf32>
    %cst_9 = arith.constant 1.000000e+00 : f32
    %26 = vector.broadcast %cst_9 : f32 to vector<8x512xf32>
    %27 = arith.subf %26, %25 : vector<8x512xf32>
    %28 = arith.mulf %27, %27 : vector<8x512xf32>
    %29 = arith.mulf %11, %28 : vector<8x512xf32>
    %cst_10 = arith.constant 2.500000e-01 : f32
    %30 = vector.broadcast %cst_10 : f32 to vector<8x512xf32>
    %31 = arith.mulf %30, %1 : vector<8x512xf32>
    %cst_11 = arith.constant 1.000000e+00 : f32
    %32 = vector.broadcast %cst_11 : f32 to vector<8x512xf32>
    %33 = arith.subf %32, %1 : vector<8x512xf32>
    %cst_12 = arith.constant 7.500000e-01 : f32
    %34 = vector.broadcast %cst_12 : f32 to vector<8x512xf32>
    %35 = arith.mulf %34, %33 : vector<8x512xf32>
    %36 = arith.addf %31, %35 : vector<8x512xf32>
    %37 = arith.mulf %36, %29 : vector<8x512xf32>
    %38 = vector.shape_cast %37 : vector<8x512xf32> to vector<1x8x512xf32>
    %cst_13 = arith.constant dense<0.000000e+00> : vector<8x512xf32>
    %39 = vector.multi_reduction <add>, %38, %cst_13 [0] : vector<1x8x512xf32> to vector<8x512xf32>
    %c0_14 = arith.constant 0 : index
    %c0_15 = arith.constant 0 : index
    %c0_16 = arith.constant 0 : index
    %40 = vector.load %arg3[%c0_14, %c0_15, %c0_16] : memref<1x8x512xf32, #tpu.memory_space<vmem>>, vector<1x8x512xf32>
    %41 = vector.shape_cast %40 : vector<1x8x512xf32> to vector<8x512xf32>
    %42 = vector.shape_cast %39 : vector<8x512xf32> to vector<1x8x512xf32>
    tpu.vector_store %arg3[%c0_14, %c0_15, %c0_16], %42 {strides = array<i32>} : memref<1x8x512xf32, #tpu.memory_space<vmem>>, vector<1x8x512xf32>,
    return
  }
  func.func @transform_0(%arg0: i32) -> (i32, i32) {
    %c0_i32 = arith.constant 0 : i32
    %c0_i32_0 = arith.constant 0 : i32
    return %arg0, %c0_i32 : i32, i32
  }
  func.func @transform_1(%arg0: i32) -> (i32, i32) {
    %c0_i32 = arith.constant 0 : i32
    %c0_i32_0 = arith.constant 0 : i32
    return %arg0, %c0_i32 : i32, i32
  }
  func.func @transform_2(%arg0: i32) -> (i32, i32, i32) {
    %c0_i32 = arith.constant 0 : i32
    %c0_i32_0 = arith.constant 0 : i32
    %c0_i32_1 = arith.constant 0 : i32
    return %arg0, %c0_i32, %c0_i32_0 : i32, i32, i32
  }
}

</mosaic_0001>

<bundles_post_ra>
// kernel: tpu_custom_call.1
= control target key start
LH: loop header
LB: loop body
LE: loop exit
PB: predicated region body
PF: predicated region fallthrough
CT: control target
= control target key end

     0   :  { %7 = vsyncpa [#allocation3], 0  ;;  %s564_s0 = inlined_call_operand.hbm [shape: f32[8,512], index: 0, kind: input, shape index: {}]   ;;  %s565_s1 = inlined_call_operand.hbm [shape: f32[8,512], index: 1, kind: input, shape index: {}]   ;;  %s566_s2 = inlined_call_operand.hbm [shape: f32[1,8,512], index: 2, kind: output, shape index: {}]  }
   0x1   :  { %8 = vsyncpa [#allocation6], 0 }
   0x2   :  { %9 = vsyncpa [#allocation4], 0  ;;  %s15_s11 = sshll.u32 %s564_s0, 4  ;;  %s367_s12 = smov [#allocation2]   ;;  %s16_s11 = int_to_ptr.hbm [resolvable:$true] %s15_s11 }
   0x3   :  { %s17_s13 = sshll.u32 %s367_s12, 4  ;;  %s26_s16 = sshll.u32 %s565_s1, 4  ;;  %s18_s13 = int_to_ptr.vmem [resolvable:$true] %s17_s13  ;;  %s27_s16 = int_to_ptr.hbm [resolvable:$true] %s26_s16 }
   0x4   :  { %20 = dma.hbm_to_vmem [thread:$0]  %s16_s11, 512, %s18_s13, [#allocation3]  }
   0x5   :  { %s368_s17 = smov [#allocation5]  }
   0x6   :  { %s28_s18 = sshll.u32 %s368_s17, 4  ;;  %s29_s18 = int_to_ptr.vmem [resolvable:$true] %s28_s18 }
   0x7   :  { %31 = dma.hbm_to_vmem [thread:$0]  %s27_s16, 512, %s29_s18, [#allocation6]  }
   0x8   :  { %361 = dma.done.wait [#allocation3], 512  }
   0x9   :  { %362 = vsyncadd [#allocation3], 4294966784 }
   0xa   :  { %363 = dma.done.wait [#allocation6], 512  }
   0xb   :  { %364 = vsyncadd [#allocation6], 4294966784  ;;  %v40_v0 = vld [vmem:[#allocation2] sm:$0xff]  ;;  %v391_v1 = vld [vmem:[#allocation2 + $0x8] sm:$0xff]  ;;  %s369_s0 = smov [#allocation7]   ;;  %s251_s21 = sshll.u32 %s566_s2, 4  ;;  %s252_s21 = int_to_ptr.hbm [resolvable:$true] %s251_s21 }
   0xc   :  { %v48_v2 = vand.u32 2147483647, %v40_v0  ;;  %v393_v3 = vld [vmem:[#allocation2 + $0x10] sm:$0xff]  ;;  %v49_v4 = vand.u32 2147483647, %v391_v1  ;;  %v397_v11 = vld [vmem:[#allocation2 + $0x18] sm:$0xff] }
   0xd   :  { %v50_v5 = vand.u32 2147483647, %v393_v3  ;;  %v51_v13 = vand.u32 2147483647, %v397_v11  ;;  %v400_v18 = vld [vmem:[#allocation5] sm:$0xff]  ;;  %v64_v20 = vmax.f32 %v40_v0, 0.0 }
   0xe   :  { %v52_v6 = vsub.f32 0.0, %v48_v2  ;;  %v53_v7 = vsub.f32 0.0, %v49_v4  ;;  %v68_v21 = vmul.f32 %v400_v18, %v40_v0  ;;  %v405_v22 = vld [vmem:[#allocation5 + $0x8] sm:$0xff]  ;;  %v65_v24 = vmax.f32 %v391_v1, 0.0  ;;  %v420_v34 = vld [vmem:[#allocation5 + $0x10] sm:$0xff]  ;;  %s249_s1 = sshll.u32 %s369_s0, 4  ;;  %s250_s1 = int_to_ptr.vmem [resolvable:$true] %s249_s1 }
   0xf   :  { %v54_v8 = vsub.f32 0.0, %v50_v5  ;;  %v55_v17 = vsub.f32 0.0, %v51_v13  ;;  %v69_v25 = vmul.f32 %v405_v22, %v391_v1  ;;  %vm116_vm0 = vcmp.ge.f32.partialorder %v40_v0, 0.0 }
  0x10   :  { %v56_v9 = vmul.f32 1.442695, %v52_v6  ;;  %v58_v10 = vmul.f32 1.442695, %v53_v7  ;;  %v413_v28 = vsub.f32 %v64_v20, %v68_v21  ;;  %v196_v29 = vsub.f32 1.0, %v400_v18 }
  0x11   :  { %v60_v12 = vmul.f32 1.442695, %v54_v8  ;;  %v62_v27 = vmul.f32 1.442695, %v55_v17  ;;  %vm117_vm1 = vcmp.ge.f32.partialorder %v391_v1, 0.0  ;;  %v197_v30 = vsub.f32 1.0, %v405_v22 }
  0x12   :  { %265 = vpow2.f32 %v56_v9  ;;  %v418_v32 = vsub.f32 %v65_v24, %v69_v25  ;;  %v426_v36 = vmul.f32 0.25, %v400_v18  ;;  %v66_v37 = vmax.f32 %v393_v3, 0.0 }
  0x13   :  { %267 = vpow2.f32 %v58_v10  ;;  %v431_v38 = vmul.f32 %v420_v34, %v393_v3  ;;  %v435_v42 = vmul.f32 0.75, %v196_v29  ;;  %vm118_vm4 = vcmp.ge.f32.partialorder %v393_v3, 0.0 }
  0x14   :  { %269 = vpow2.f32 %v60_v12  ;;  %v221_v1 = vmul.f32 0.25, %v405_v22  ;;  %v225_v2 = vmul.f32 0.75, %v197_v30  ;;  %v198_v57 = vsub.f32 1.0, %v420_v34 }
  0x16   :  { %v229_v0 = vadd.f32 %v225_v2, %v221_v1 }
  0x18   :  { %v266_v14 = vpop.eup %265 }
  0x19   :  { %v268_v15 = vpop.eup %267  ;;  %v76_v16 = vadd.f32 1.0, %v266_v14  ;;  %v79_v23 = vmul.f32 -0.5, %v266_v14  ;;  %v82_v40 = vand.u32 2147483647, %v266_v14  ;;  %v120_v43 = vsel %vm116_vm0, 1.0, %v266_v14 }
  0x1a   :  { %v402_v19 = vadd.f32 1.0, %v268_v15  ;;  %v410_v26 = vpop.eup %269  ;;  %v88_v33 = vmul.f32 -0.5, %v268_v15  ;;  %v91_v45 = vand.u32 2147483647, %v268_v15  ;;  %v121_v53 = vsel %vm117_vm1, 1.0, %v268_v15 }
  0x1b   :  { %271 = vrcp.f32 %v76_v16  ;;  %v80_v31 = vadd.f32 1.0, %v79_v23  ;;  %v423_v35 = vadd.f32 1.0, %v410_v26  ;;  %v137_v41 = vand.u32 2147483647, %v76_v16 }
  0x1c   :  { %273 = vrcp.f32 %v402_v19  ;;  %vm133_vm2 = vweird.f32 %v76_v16  ;;  %v139_v48 = vand.u32 2147483648, %v76_v16  ;;  %v89_v49 = vadd.f32 1.0, %v88_v33 }
  0x1d   :  { %275 = vpow2.f32 %v62_v27  ;;  %v439_v47 = vmul.f32 %v266_v14, %v80_v31  ;;  %vm444_vm5 = vcmp.eq.f32.partialorder %v137_v41, 8.507059e+37  ;;  %v152_v54 = vand.u32 2147483647, %v402_v19 }
  0x1e   :  { %277 = vlog2.f32 %v76_v16  ;;  %v154_v55 = vand.u32 2147483648, %v402_v19  ;;  %vm454_vm6 = vcmp.lt.f32.partialorder %v82_v40, 0.0004427343  ;;  %vm148_vm7 = vweird.f32 %v402_v19 }
  0x1f   :  { %279 = vrcp.f32 %v423_v35  ;;  %v140_v62 = vor.u32 1.1754944e-38, %v139_v48  ;;  %v465_v63 = vmul.f32 %v268_v15, %v89_v49  ;;  %vm467_vm10 = vcmp.lt.f32.partialorder %v91_v45, 0.0004427343 }
  0x20   :  { %281 = vlog2.f32 %v402_v19  ;;  %v97_v7 = vmul.f32 -0.5, %v410_v26  ;;  %vm480_vm12 = vcmp.eq.f32.partialorder %v152_v54, 8.507059e+37  ;;  %v155_v10 = vor.u32 1.1754944e-38, %v154_v55 }
  0x21   :  { %v272_v39 = vpop.eup %271  ;;  %283 = vlog2.f32 %v423_v35  ;;  %vm163_vm13 = vweird.f32 %v423_v35  ;;  %v169_v17 = vand.u32 2147483648, %v423_v35  ;;  %v100_v27 = vand.u32 2147483647, %v410_v26 }
  0x22   :  { %v129_v44 = vmul.f32 %v272_v39, %v76_v16  ;;  %v274_v46 = vpop.eup %273  ;;  %vm134_vm3 = vweird.f32 %v272_v39  ;;  %v167_v16 = vand.u32 2147483647, %v423_v35  ;;  %v122_v49 = vsel %vm118_vm4, 1.0, %v410_v26 }
  0x23   :  { %v144_v51 = vmul.f32 %v274_v46, %v402_v19  ;;  %v452_v56 = vpop.eup %275  ;;  %vm149_vm8 = vweird.f32 %v274_v46  ;;  %vm461_vm9 = vmor %vm133_vm2, %vm134_vm3  ;;  %vm514_vm1 = vcmp.lt.f32.partialorder %v100_v27, 0.0004427343  ;;  %vm119_vm4 = vcmp.ge.f32.partialorder %v397_v11, 0.0 }
  0x24   :  { %v130_v50 = vsub.f32 1.0, %v129_v44  ;;  %v278_v60 = vpop.eup %277  ;;  %vm476_vm11 = vmor %vm148_vm7, %vm149_vm8  ;;  %v493_v21 = vadd.f32 1.0, %v452_v56  ;;  %vm168_vm0 = vcmp.eq.f32.partialorder %v167_v16, 8.507059e+37 }
  0x25   :  { %v145_v59 = vsub.f32 1.0, %v144_v51  ;;  %v280_v4 = vpop.eup %279  ;;  %v78_v23 = vmul.f32 0.6931472, %v278_v60 }
  0x26   :  { %v131_v58 = vmul.f32 %v272_v39, %v130_v50  ;;  %v159_v12 = vmul.f32 %v280_v4, %v423_v35  ;;  %v282_v13 = vpop.eup %281  ;;  %vm164_vm14 = vweird.f32 %v280_v4  ;;  %285 = vrcp.f32 %v493_v21 }
  0x27   :  { %v146_v6 = vmul.f32 %v274_v46, %v145_v59  ;;  %v87_v31 = vmul.f32 0.6931472, %v282_v13  ;;  %v284_v41 = vpop.eup %283  ;;  %vm503_vm15 = vmor %vm163_vm13, %vm164_vm14  ;;  %v84_v54 = vsel %vm454_vm6, %v439_v47, %v78_v23  ;;  %v74_v47 = vsub.f32 %v66_v37, %v431_v38 }
  0x28   :  { %v132_v5 = vadd.f32 %v272_v39, %v131_v58  ;;  %v160_v20 = vsub.f32 1.0, %v159_v12  ;;  %v96_v55 = vmul.f32 0.6931472, %v284_v41  ;;  %287 = vlog2.f32 %v493_v21 }
  0x29   :  { %v147_v15 = vadd.f32 %v274_v46, %v146_v6  ;;  %vm178_vm2 = vweird.f32 %v493_v21  ;;  %v184_v1 = vand.u32 2147483648, %v493_v21  ;;  %v226_v12 = vmul.f32 0.75, %v198_v57 }
  0x2a   :  { %v136_v14 = vsel %vm461_vm9, %v272_v39, %v132_v5  ;;  %v98_v39 = vadd.f32 1.0, %v97_v7  ;;  %v161_v40 = vmul.f32 %v280_v4, %v160_v20  ;;  %v106_v13 = vmul.f32 -0.5, %v452_v56 }
  0x2b   :  { %v141_v19 = vsel %vm444_vm5, %v140_v62, %v136_v14  ;;  %v151_v25 = vsel %vm476_vm11, %v274_v46, %v147_v15  ;;  %v170_v46 = vor.u32 1.1754944e-38, %v169_v17  ;;  %v228_v62 = vadd.f32 %v435_v42, %v426_v36 }
  0x2c   :  { %v142_v24 = vmul.f32 %v141_v19, %v120_v43  ;;  %v156_v33 = vsel %vm480_vm12, %v155_v10, %v151_v25  ;;  %v162_v50 = vadd.f32 %v280_v4, %v161_v40  ;;  %v99_v58 = vmul.f32 %v410_v26, %v98_v39 }
  0x2d   :  { %v157_v48 = vmul.f32 %v156_v33, %v121_v53  ;;  %v222_v10 = vmul.f32 0.25, %v420_v34  ;;  %v185_v23 = vor.u32 1.1754944e-38, %v184_v1  ;;  %v47_v33 = vld [vmem:[#allocation5 + $0x18] sm:$0xff]  ;;  %v107_v39 = vadd.f32 1.0, %v106_v13 }
  0x2e   :  { %v188_v44 = vmul.f32 %v142_v24, %v400_v18  ;;  %v192_v45 = vsub.f32 1.0, %v142_v24  ;;  %v166_v59 = vsel %vm503_vm15, %v280_v4, %v162_v50  ;;  %v93_v18 = vsel %vm467_vm10, %v465_v63, %v87_v31  ;;  %v286_v63 = vpop.eup %285 }
  0x2f   :  { %v189_v52 = vmul.f32 %v157_v48, %v405_v22  ;;  %v193_v53 = vsub.f32 1.0, %v157_v48  ;;  %v171_v61 = vsel %vm168_vm0, %v170_v46, %v166_v59  ;;  %v112_v4 = vadd.f32 %v84_v54, %v413_v28  ;;  %v288_v24 = vpop.eup %287 }
  0x30   :  { %v200_v51 = vmul.f32 %v196_v29, %v192_v45  ;;  %v172_v26 = vmul.f32 %v171_v61, %v122_v49  ;;  %v113_v22 = vadd.f32 %v93_v18, %v418_v32  ;;  %v174_v37 = vmul.f32 %v286_v63, %v493_v21 }
  0x31   :  { %v201_v29 = vmul.f32 %v197_v30, %v193_v53  ;;  %v102_v30 = vsel %vm514_vm1, %v99_v58, %v96_v55  ;;  %v182_v28 = vand.u32 2147483647, %v493_v21  ;;  %vm179_vm3 = vweird.f32 %v286_v63 }
  0x32   :  { %v204_v60 = vadd.f32 %v200_v51, %v188_v44  ;;  %v190_v36 = vmul.f32 %v172_v26, %v420_v34  ;;  %v194_v42 = vsub.f32 1.0, %v172_v26  ;;  %v175_v8 = vsub.f32 1.0, %v174_v37  ;;  %vm550_vm5 = vmor %vm178_vm2, %vm179_vm3 }
  0x33   :  { %v205_v6 = vadd.f32 %v201_v29, %v189_v52  ;;  %v114_v17 = vadd.f32 %v102_v30, %v74_v47  ;;  %vm183_vm6 = vcmp.eq.f32.partialorder %v182_v28, 8.507059e+37  ;;  %v230_v31 = vadd.f32 %v226_v12, %v222_v10 }
  0x34   :  { %v208_v5 = vsub.f32 1.0, %v204_v60  ;;  %v202_v38 = vmul.f32 %v198_v57, %v194_v42  ;;  %v176_v16 = vmul.f32 %v286_v63, %v175_v8  ;;  %v123_v40 = vsel %vm119_vm4, 1.0, %v452_v56 }
  0x35   :  { %v209_v3 = vsub.f32 1.0, %v205_v6  ;;  %v109_v41 = vand.u32 2147483647, %v452_v56  ;;  %v67_v48 = vmax.f32 %v397_v11, 0.0  ;;  %v71_v43 = vmul.f32 %v47_v33, %v397_v11 }
  0x36   :  { %v212_v7 = vmul.f32 %v208_v5, %v208_v5  ;;  %v206_v9 = vadd.f32 %v202_v38, %v190_v36  ;;  %v177_v25 = vadd.f32 %v286_v63, %v176_v16  ;;  %v199_v49 = vsub.f32 1.0, %v47_v33 }
  0x37   :  { %v213_v2 = vmul.f32 %v209_v3, %v209_v3  ;;  %v105_v51 = vmul.f32 0.6931472, %v288_v24  ;;  %v108_v52 = vmul.f32 %v452_v56, %v107_v39  ;;  %vm110_vm7 = vcmp.lt.f32.partialorder %v109_v41, 0.0004427343 }
  0x38   :  { %v216_v32 = vmul.f32 %v212_v7, %v112_v4  ;;  %v210_v19 = vsub.f32 1.0, %v206_v9  ;;  %v181_v21 = vsel %vm550_vm5, %v286_v63, %v177_v25  ;;  %v75_v54 = vsub.f32 %v67_v48, %v71_v43 }
  0x39   :  { %v217_v15 = vmul.f32 %v213_v2, %v113_v22  ;;  %v186_v45 = vsel %vm183_vm6, %v185_v23, %v181_v21  ;;  %v111_v58 = vsel %vm110_vm7, %v108_v52, %v105_v51  ;;  %v223_v60 = vmul.f32 0.25, %v47_v33 }
  0x3a   :  { %v232_v14 = vmul.f32 %v228_v62, %v216_v32  ;;  %v214_v27 = vmul.f32 %v210_v19, %v210_v19  ;;  %v187_v46 = vmul.f32 %v186_v45, %v123_v40  ;;  %v227_v18 = vmul.f32 0.75, %v199_v49 }
  0x3b   :  { %v233_v34 = vmul.f32 %v229_v0, %v217_v15  ;;  %v115_v29 = vadd.f32 %v111_v58, %v75_v54 }
  0x3c   :  { %240 = vst [vmem:[#allocation7] sm:$0xff] %v232_v14  ;;  %v218_v44 = vmul.f32 %v214_v27, %v114_v17  ;;  %v191_v53 = vmul.f32 %v187_v46, %v47_v33  ;;  %v195_v35 = vsub.f32 1.0, %v187_v46  ;;  %v231_v11 = vadd.f32 %v227_v18, %v223_v60 }
  0x3d   :  { %241 = vst [vmem:[#allocation7 + $0x8] sm:$0xff] %v233_v34 }
  0x3e   :  { %v234_v50 = vmul.f32 %v230_v31, %v218_v44  ;;  %v203_v55 = vmul.f32 %v199_v49, %v195_v35 }
  0x40   :  { %242 = vst [vmem:[#allocation7 + $0x10] sm:$0xff] %v234_v50  ;;  %v207_v59 = vadd.f32 %v203_v55, %v191_v53 }
  0x42   :  { %v211_v61 = vsub.f32 1.0, %v207_v59 }
  0x44   :  { %v215_v62 = vmul.f32 %v211_v61, %v211_v61 }
  0x46   :  { %v219_v56 = vmul.f32 %v215_v62, %v115_v29 }
  0x48   :  { %v235_v47 = vmul.f32 %v231_v11, %v219_v56 }
  0x4a   :  { %243 = vst [vmem:[#allocation7 + $0x18] sm:$0xff] %v235_v47 }
  0x4b   :  { %254 = dma.vmem_to_hbm [thread:$0]  %s250_s1, 512, %s252_s21, [#allocation4]  }
  0x4c   :  { %365 = dma.done.wait [#allocation4], 512  }
  0x4d   :  { %366 = vsyncadd [#allocation4], 4294966784 }
  0x4e   :  { %259 = vsyncpa [#allocation3], 1 }
  0x4f   :  { %260 = vsyncpa [#allocation6], 1 }
  0x50   :  { %261 = vsyncpa [#allocation4], 1 }

</bundles_post_ra>
